<compile_context>
chip_gen: v5e
topology: v5e:2x2
jax: 0.10.0
libtpu: 0.0.40
codegen_flags: <defaults>
</compile_context>

<pallas_src>
import functools

import jax
import jax.numpy as jnp
from jax.experimental import pallas as pl
from jax.experimental.pallas import tpu as pltpu


def _cdiv(a, b):
    return -(-a // b)


def _round_up(a, b):
    return _cdiv(a, b) * b


def _dc_ce_kernel(x_ref, t_ref, w_ref, out_ref, acc_tp, acc_fp, acc_fn, acc_ce):
    # x_ref : (1, C, TM, 128) f32 logits     t_ref : (1, 1, TM, 128) i32 labels (-1 = pad)
    # w_ref : (1, 1, TM, 128) f32 weights    out_ref: (1, ROWS, 128) merged lane partials
    # acc_* : persistent per-lane accumulators (reset on the first spatial tile).
    s = pl.program_id(1)

    @pl.when(s == 0)
    def _init():
        acc_tp[...] = jnp.zeros_like(acc_tp)
        acc_fp[...] = jnp.zeros_like(acc_fp)
        acc_fn[...] = jnp.zeros_like(acc_fn)
        acc_ce[...] = jnp.zeros_like(acc_ce)

    x = x_ref[0]                                   # (C, TM, 128)
    t = t_ref[0]                                   # (1, TM, 128) int32
    w = w_ref[0]                                   # (1, TM, 128) f32
    C = x.shape[0]

    # --- stable channel softmax / logsumexp (channel = leading axis -> VALU/EUP only)
    m = jnp.max(x, axis=0, keepdims=True)          # (1, TM, 128)
    ex = jnp.exp(x - m)                            # (C, TM, 128)
    se = jnp.sum(ex, axis=0, keepdims=True)        # (1, TM, 128)
    inv = pl.reciprocal(se, approx=False)          # one reciprocal per pixel (not per channel)
    p = ex * inv                                   # softmax probs
    lse = m + jnp.log(se)                          # logsumexp

    # --- one-hot of the integer target along the channel axis (t = -1 -> all zeros)
    ch = jax.lax.broadcasted_iota(jnp.int32, x.shape, 0)
    onehot = (ch == t).astype(jnp.float32)         # (C, TM, 128)

    # --- probmap-weighted tp / fp / fn (algebraically simplified)
    pw = p * w
    ow = onehot * w
    tp = p * ow                                    # = p * onehot * w
    fp = pw - tp
    fn = ow - tp

    # --- cross entropy per pixel: lse - x[target]; mask padded pixels (t < 0)
    x_tgt = jnp.sum(x * onehot, axis=0, keepdims=True)     # (1, TM, 128)
    valid = (t >= 0).astype(jnp.float32)
    ce = (lse - x_tgt) * valid                              # (1, TM, 128)

    # --- per-tile reduction only over the sublane (spatial-row) axis -> cheap;
    #     the 128-lane reduction is done once in the wrapper.
    acc_tp[...] += jnp.sum(tp, axis=1)             # (C, 128)
    acc_fp[...] += jnp.sum(fp, axis=1)
    acc_fn[...] += jnp.sum(fn, axis=1)
    acc_ce[...] += jnp.sum(ce, axis=1)             # (1, 128)

    @pl.when(s == pl.num_programs(1) - 1)
    def _finalize():
        rows = out_ref.shape[1]
        out_ref[0, 0:C, :] = acc_tp[...]
        out_ref[0, C:2 * C, :] = acc_fp[...]
        out_ref[0, 2 * C:3 * C, :] = acc_fn[...]
        out_ref[0, 3 * C:3 * C + 1, :] = acc_ce[...]
        pad_rows = rows - (3 * C + 1)
        if pad_rows > 0:  # static
            out_ref[0, 3 * C + 1:rows, :] = jnp.zeros((pad_rows, 128), jnp.float32)


@functools.partial(jax.jit, static_argnames=("weight_ce", "weight_dice",
                                             "batch_dice", "do_bg", "smooth"))
def dc_and_ce_loss(net_output, target, weight_map=None, *, weight_ce=1.0,
                   weight_dice=1.0, batch_dice=True, do_bg=False, smooth=1e-5):
    """net_output: (B, C, H, W) logits; target: (B, 1, H, W) integer labels;
    weight_map: optional (B, 1, H, W) per-pixel weights (affects Dice only)."""
    B, C, H, W = net_output.shape
    N = H * W

    x = net_output.reshape(B, C, N).astype(jnp.float32)
    t = target.reshape(B, 1, N).astype(jnp.int32)
    if weight_map is None:
        w = jnp.ones((B, 1, N), jnp.float32)
    else:
        w = weight_map.reshape(B, 1, N).astype(jnp.float32)

    # ----- spatial tiling: lanes = 128-wide columns, sublanes = spatial rows -----
    TM_MAX = 256                               # <= 32K pixels / tile (16K-32K lane sweet spot)
    N128 = _cdiv(N, 128)                       # number of 128-lane columns
    NT = _cdiv(N128, TM_MAX)                   # spatial grid extent
    TM = _round_up(_cdiv(N128, NT), 8)         # sublane rows per tile (multiple of 8)
    N128_pad = NT * TM
    N_pad = N128_pad * 128

    pad = N_pad - N
    if pad:
        x = jnp.pad(x, ((0, 0), (0, 0), (0, pad)))
        t = jnp.pad(t, ((0, 0), (0, 0), (0, pad)), constant_values=-1)  # mask CE
        w = jnp.pad(w, ((0, 0), (0, 0), (0, pad)))                      # zero weight
    x = x.reshape(B, C, N128_pad, 128)
    t = t.reshape(B, 1, N128_pad, 128)
    w = w.reshape(B, 1, N128_pad, 128)

    ROWS = _round_up(3 * C + 1, 8)             # lane-dense merged output rows

    cost = pl.CostEstimate(
        flops=2 * B * N_pad * (6 * C + 6),
        transcendentals=B * N_pad * (C + 2),
        bytes_accessed=4 * B * N_pad * (C + 2) + 4 * B * ROWS * 128,
    )

    merged = pl.pallas_call(
        _dc_ce_kernel,
        out_shape=jax.ShapeDtypeStruct((B, ROWS, 128), jnp.float32),
        grid=(B, NT),
        in_specs=[
            pl.BlockSpec((1, C, TM, 128), lambda b, s: (b, 0, s, 0)),
            pl.BlockSpec((1, 1, TM, 128), lambda b, s: (b, 0, s, 0)),
            pl.BlockSpec((1, 1, TM, 128), lambda b, s: (b, 0, s, 0)),
        ],
        out_specs=pl.BlockSpec((1, ROWS, 128), lambda b, s: (b, 0, 0)),
        scratch_shapes=[
            pltpu.VMEM((C, 128), jnp.float32),
            pltpu.VMEM((C, 128), jnp.float32),
            pltpu.VMEM((C, 128), jnp.float32),
            pltpu.VMEM((1, 128), jnp.float32),
        ],
        compiler_params=pltpu.CompilerParams(
            dimension_semantics=("parallel", "arbitrary")),
        cost_estimate=cost,
    )(x, t, w)

    # ----- tiny finalisation in plain JAX (single 128-lane reduce + scalar glue) -----
    tp = jnp.sum(merged[:, 0:C, :], axis=-1)          # (B, C)
    fp = jnp.sum(merged[:, C:2 * C, :], axis=-1)
    fn = jnp.sum(merged[:, 2 * C:3 * C, :], axis=-1)
    ce_sum = jnp.sum(merged[:, 3 * C, :])

    ce_loss = ce_sum / (B * N)                        # mean over real pixels only

    if batch_dice:
        tp_s, fp_s, fn_s = tp.sum(0), fp.sum(0), fn.sum(0)   # (C,)
        dc = (2.0 * tp_s + smooth) / (2.0 * tp_s + fp_s + fn_s + smooth + 1e-8)
        if not do_bg:
            dc = dc[1:]
    else:
        dc = (2.0 * tp + smooth) / (2.0 * tp + fp + fn + smooth + 1e-8)
        if not do_bg:
            dc = dc[:, 1:]
    dc_loss = -jnp.mean(dc)

    return weight_ce * ce_loss + weight_dice * dc_loss


def _reference_loss(net_output, target, weight_map, *, weight_ce=1.0,
                    weight_dice=1.0, batch_dice=True, do_bg=False, smooth=1e-5):
    """Pure-JAX reference mirroring the PyTorch DC_and_CE_loss forward."""
    B, C, H, W = net_output.shape
    logp = jax.nn.log_softmax(net_output.astype(jnp.float32), axis=1)
    p = jnp.exp(logp)
    onehot = jax.nn.one_hot(target[:, 0].astype(jnp.int32), C, axis=1,
                            dtype=jnp.float32)                    # (B,C,H,W)
    wm = weight_map.astype(jnp.float32)                           # (B,1,H,W)
    axes = (0, 2, 3) if batch_dice else (2, 3)
    tp = jnp.sum(p * onehot * wm, axis=axes)
    fp = jnp.sum(p * (1 - onehot) * wm, axis=axes)
    fn = jnp.sum((1 - p) * onehot * wm, axis=axes)
    dc = (2 * tp + smooth) / (2 * tp + fp + fn + smooth + 1e-8)
    dc = dc[1:] if (batch_dice and not do_bg) else (dc[:, 1:] if not do_bg else dc)
    dc_loss = -jnp.mean(dc)
    ce_loss = -jnp.mean(jnp.take_along_axis(logp, target.astype(jnp.int32), axis=1))
    return weight_ce * ce_loss + weight_dice * dc_loss


if __name__ == "__main__":
    key = jax.random.PRNGKey(0)
    k1, k2, k3 = jax.random.split(key, 3)

    B, C, H, W = 2, 4, 16, 16
    net_output = jax.random.normal(k1, (B, C, H, W), dtype=jnp.float32)
    target = jax.random.randint(k2, (B, 1, H, W), 0, C, dtype=jnp.int32)
    weight_map = jax.random.uniform(k3, (B, 1, H, W), dtype=jnp.float32) + 0.5

    loss = dc_and_ce_loss(net_output, target, weight_map)
    loss = jax.block_until_ready(loss)

    ref = _reference_loss(net_output, target, weight_map)
    assert jnp.allclose(loss, ref, rtol=1e-5, atol=1e-5), (loss, ref)

    print("KERNEL_OK")
</pallas_src>

<mosaic_0001>
module attributes {stable_mosaic.version = 11 : i64} {
  func.func @_dc_ce_kernel(%arg0: i32, %arg1: i32, %arg2: memref<1x4x8x128xf32, #tpu.memory_space<vmem>>, %arg3: memref<1x1x8x128xi32, #tpu.memory_space<vmem>>, %arg4: memref<1x1x8x128xf32, #tpu.memory_space<vmem>>, %arg5: memref<1x16x128xf32, #tpu.memory_space<vmem>>, %arg6: memref<4x128xf32, #tpu.memory_space<vmem>>, %arg7: memref<4x128xf32, #tpu.memory_space<vmem>>, %arg8: memref<4x128xf32, #tpu.memory_space<vmem>>, %arg9: memref<1x128xf32, #tpu.memory_space<vmem>>) attributes {dimension_semantics = [#tpu.dimension_semantics<parallel>, #tpu.dimension_semantics<arbitrary>], iteration_bounds = array<i64: 2, 1>, scalar_prefetch = 0 : i64, scratch_operands = 4 : i64, tpu.core_type = #tpu.core_type<tc>, window_params = [{transform_indices = @transform_0, window_bounds = array<i64: 1, 4, 8, 128>}, {transform_indices = @transform_1, window_bounds = array<i64: 1, 1, 8, 128>}, {transform_indices = @transform_2, window_bounds = array<i64: 1, 1, 8, 128>}, {transform_indices = @transform_3, window_bounds = array<i64: 1, 16, 128>}]} {
    %c0_i32 = arith.constant 0 : i32
    %0 = arith.cmpi eq, %arg1, %c0_i32 : i32
    %1 = arith.extui %0 : i1 to i32
    %c0_i32_0 = arith.constant 0 : i32
    %2 = arith.cmpi ne, %1, %c0_i32_0 : i32
    scf.if %2 {
      %cst_37 = arith.constant 0.000000e+00 : f32
      %61 = vector.broadcast %cst_37 : f32 to vector<4x128xf32>
      %c0_38 = arith.constant 0 : index
      %c0_39 = arith.constant 0 : index
      %62 = vector.load %arg6[%c0_38, %c0_39] : memref<4x128xf32, #tpu.memory_space<vmem>>, vector<4x128xf32>
      tpu.vector_store %arg6[%c0_38, %c0_39], %61 {strides = array<i32>} : memref<4x128xf32, #tpu.memory_space<vmem>>, vector<4x128xf32>,
      %cst_40 = arith.constant 0.000000e+00 : f32
      %63 = vector.broadcast %cst_40 : f32 to vector<4x128xf32>
      %c0_41 = arith.constant 0 : index
      %c0_42 = arith.constant 0 : index
      %64 = vector.load %arg7[%c0_41, %c0_42] : memref<4x128xf32, #tpu.memory_space<vmem>>, vector<4x128xf32>
      tpu.vector_store %arg7[%c0_41, %c0_42], %63 {strides = array<i32>} : memref<4x128xf32, #tpu.memory_space<vmem>>, vector<4x128xf32>,
      %cst_43 = arith.constant 0.000000e+00 : f32
      %65 = vector.broadcast %cst_43 : f32 to vector<4x128xf32>
      %c0_44 = arith.constant 0 : index
      %c0_45 = arith.constant 0 : index
      %66 = vector.load %arg8[%c0_44, %c0_45] : memref<4x128xf32, #tpu.memory_space<vmem>>, vector<4x128xf32>
      tpu.vector_store %arg8[%c0_44, %c0_45], %65 {strides = array<i32>} : memref<4x128xf32, #tpu.memory_space<vmem>>, vector<4x128xf32>,
      %cst_46 = arith.constant 0.000000e+00 : f32
      %67 = vector.broadcast %cst_46 : f32 to vector<1x128xf32>
      %c0_47 = arith.constant 0 : index
      %c0_48 = arith.constant 0 : index
      %68 = vector.load %arg9[%c0_47, %c0_48] : memref<1x128xf32, #tpu.memory_space<vmem>>, vector<1x128xf32>
      tpu.vector_store %arg9[%c0_47, %c0_48], %67 {strides = array<i32>} : memref<1x128xf32, #tpu.memory_space<vmem>>, vector<1x128xf32>,
    } else {
    }
    %c0 = arith.constant 0 : index
    %c0_1 = arith.constant 0 : index
    %c0_2 = arith.constant 0 : index
    %c0_3 = arith.constant 0 : index
    %3 = vector.load %arg2[%c0, %c0_1, %c0_2, %c0_3] : memref<1x4x8x128xf32, #tpu.memory_space<vmem>>, vector<1x4x8x128xf32>
    %4 = vector.shape_cast %3 : vector<1x4x8x128xf32> to vector<4x8x128xf32>
    %c0_4 = arith.constant 0 : index
    %c0_5 = arith.constant 0 : index
    %c0_6 = arith.constant 0 : index
    %c0_7 = arith.constant 0 : index
    %5 = vector.load %arg3[%c0_4, %c0_5, %c0_6, %c0_7] : memref<1x1x8x128xi32, #tpu.memory_space<vmem>>, vector<1x1x8x128xi32>
    %6 = vector.shape_cast %5 : vector<1x1x8x128xi32> to vector<1x8x128xi32>
    %c0_8 = arith.constant 0 : index
    %c0_9 = arith.constant 0 : index
    %c0_10 = arith.constant 0 : index
    %c0_11 = arith.constant 0 : index
    %7 = vector.load %arg4[%c0_8, %c0_9, %c0_10, %c0_11] : memref<1x1x8x128xf32, #tpu.memory_space<vmem>>, vector<1x1x8x128xf32>
    %8 = vector.shape_cast %7 : vector<1x1x8x128xf32> to vector<1x8x128xf32>
    %cst = arith.constant dense<0xFF800000> : vector<8x128xf32>
    %9 = vector.multi_reduction <maximumf>, %4, %cst [0] : vector<4x8x128xf32> to vector<8x128xf32>
    %10 = vector.shape_cast %9 : vector<8x128xf32> to vector<1x8x128xf32>
    %11 = vector.broadcast %10 : vector<1x8x128xf32> to vector<4x8x128xf32>
    %12 = arith.subf %4, %11 : vector<4x8x128xf32>
    %13 = math.exp %12 : vector<4x8x128xf32>
    %cst_12 = arith.constant dense<0.000000e+00> : vector<8x128xf32>
    %14 = vector.multi_reduction <add>, %13, %cst_12 [0] : vector<4x8x128xf32> to vector<8x128xf32>
    %15 = vector.shape_cast %14 : vector<8x128xf32> to vector<1x8x128xf32>
    %16 = tpu.reciprocal %15 : vector<1x8x128xf32> -> vector<1x8x128xf32>
    %17 = vector.broadcast %16 : vector<1x8x128xf32> to vector<4x8x128xf32>
    %18 = arith.mulf %13, %17 : vector<4x8x128xf32>
    %19 = math.log %15 : vector<1x8x128xf32>
    %20 = arith.addf %10, %19 : vector<1x8x128xf32>
    %21 = tpu.iota {dimensions = array<i32: 0>} : vector<4x8x128xi32>
    %22 = vector.broadcast %6 : vector<1x8x128xi32> to vector<4x8x128xi32>
    %23 = arith.cmpi eq, %21, %22 : vector<4x8x128xi32>
    %24 = arith.extui %23 : vector<4x8x128xi1> to vector<4x8x128xi32>
    %25 = arith.sitofp %24 : vector<4x8x128xi32> to vector<4x8x128xf32>
    %26 = vector.broadcast %8 : vector<1x8x128xf32> to vector<4x8x128xf32>
    %27 = arith.mulf %18, %26 : vector<4x8x128xf32>
    %28 = vector.broadcast %8 : vector<1x8x128xf32> to vector<4x8x128xf32>
    %29 = arith.mulf %25, %28 : vector<4x8x128xf32>
    %30 = arith.mulf %18, %29 : vector<4x8x128xf32>
    %31 = arith.subf %27, %30 : vector<4x8x128xf32>
    %32 = arith.subf %29, %30 : vector<4x8x128xf32>
    %33 = arith.mulf %4, %25 : vector<4x8x128xf32>
    %cst_13 = arith.constant dense<0.000000e+00> : vector<8x128xf32>
    %34 = vector.multi_reduction <add>, %33, %cst_13 [0] : vector<4x8x128xf32> to vector<8x128xf32>
    %35 = vector.shape_cast %34 : vector<8x128xf32> to vector<1x8x128xf32>
    %c0_i32_14 = arith.constant 0 : i32
    %36 = vector.broadcast %c0_i32_14 : i32 to vector<1x8x128xi32>
    %37 = arith.cmpi sge, %6, %36 : vector<1x8x128xi32>
    %38 = arith.extui %37 : vector<1x8x128xi1> to vector<1x8x128xi32>
    %39 = arith.sitofp %38 : vector<1x8x128xi32> to vector<1x8x128xf32>
    %40 = arith.subf %20, %35 : vector<1x8x128xf32>
    %41 = arith.mulf %40, %39 : vector<1x8x128xf32>
    %c0_15 = arith.constant 0 : index
    %c0_16 = arith.constant 0 : index
    %42 = vector.load %arg6[%c0_15, %c0_16] : memref<4x128xf32, #tpu.memory_space<vmem>>, vector<4x128xf32>
    %cst_17 = arith.constant dense<0.000000e+00> : vector<4x128xf32>
    %43 = vector.multi_reduction <add>, %30, %cst_17 [1] : vector<4x8x128xf32> to vector<4x128xf32>
    %44 = arith.addf %42, %43 : vector<4x128xf32>
    %c0_18 = arith.constant 0 : index
    %c0_19 = arith.constant 0 : index
    %45 = vector.load %arg6[%c0_18, %c0_19] : memref<4x128xf32, #tpu.memory_space<vmem>>, vector<4x128xf32>
    tpu.vector_store %arg6[%c0_18, %c0_19], %44 {strides = array<i32>} : memref<4x128xf32, #tpu.memory_space<vmem>>, vector<4x128xf32>,
    %c0_20 = arith.constant 0 : index
    %c0_21 = arith.constant 0 : index
    %46 = vector.load %arg7[%c0_20, %c0_21] : memref<4x128xf32, #tpu.memory_space<vmem>>, vector<4x128xf32>
    %cst_22 = arith.constant dense<0.000000e+00> : vector<4x128xf32>
    %47 = vector.multi_reduction <add>, %31, %cst_22 [1] : vector<4x8x128xf32> to vector<4x128xf32>
    %48 = arith.addf %46, %47 : vector<4x128xf32>
    %c0_23 = arith.constant 0 : index
    %c0_24 = arith.constant 0 : index
    %49 = vector.load %arg7[%c0_23, %c0_24] : memref<4x128xf32, #tpu.memory_space<vmem>>, vector<4x128xf32>
    tpu.vector_store %arg7[%c0_23, %c0_24], %48 {strides = array<i32>} : memref<4x128xf32, #tpu.memory_space<vmem>>, vector<4x128xf32>,
    %c0_25 = arith.constant 0 : index
    %c0_26 = arith.constant 0 : index
    %50 = vector.load %arg8[%c0_25, %c0_26] : memref<4x128xf32, #tpu.memory_space<vmem>>, vector<4x128xf32>
    %cst_27 = arith.constant dense<0.000000e+00> : vector<4x128xf32>
    %51 = vector.multi_reduction <add>, %32, %cst_27 [1] : vector<4x8x128xf32> to vector<4x128xf32>
    %52 = arith.addf %50, %51 : vector<4x128xf32>
    %c0_28 = arith.constant 0 : index
    %c0_29 = arith.constant 0 : index
    %53 = vector.load %arg8[%c0_28, %c0_29] : memref<4x128xf32, #tpu.memory_space<vmem>>, vector<4x128xf32>
    tpu.vector_store %arg8[%c0_28, %c0_29], %52 {strides = array<i32>} : memref<4x128xf32, #tpu.memory_space<vmem>>, vector<4x128xf32>,
    %c0_30 = arith.constant 0 : index
    %c0_31 = arith.constant 0 : index
    %54 = vector.load %arg9[%c0_30, %c0_31] : memref<1x128xf32, #tpu.memory_space<vmem>>, vector<1x128xf32>
    %cst_32 = arith.constant dense<0.000000e+00> : vector<1x128xf32>
    %55 = vector.multi_reduction <add>, %41, %cst_32 [1] : vector<1x8x128xf32> to vector<1x128xf32>
    %56 = arith.addf %54, %55 : vector<1x128xf32>
    %c0_33 = arith.constant 0 : index
    %c0_34 = arith.constant 0 : index
    %57 = vector.load %arg9[%c0_33, %c0_34] : memref<1x128xf32, #tpu.memory_space<vmem>>, vector<1x128xf32>
    tpu.vector_store %arg9[%c0_33, %c0_34], %56 {strides = array<i32>} : memref<1x128xf32, #tpu.memory_space<vmem>>, vector<1x128xf32>,
    %c0_i32_35 = arith.constant 0 : i32
    %58 = arith.cmpi eq, %arg1, %c0_i32_35 : i32
    %59 = arith.extui %58 : i1 to i32
    %c0_i32_36 = arith.constant 0 : i32
    %60 = arith.cmpi ne, %59, %c0_i32_36 : i32
    scf.if %60 {
      %c0_37 = arith.constant 0 : index
      %c0_38 = arith.constant 0 : index
      %61 = vector.load %arg6[%c0_37, %c0_38] : memref<4x128xf32, #tpu.memory_space<vmem>>, vector<4x128xf32>
      %c0_39 = arith.constant 0 : index
      %c0_40 = arith.constant 0 : index
      %c0_41 = arith.constant 0 : index
      %62 = vector.load %arg5[%c0_39, %c0_40, %c0_41] : memref<1x16x128xf32, #tpu.memory_space<vmem>>, vector<1x4x128xf32>
      %63 = vector.shape_cast %62 : vector<1x4x128xf32> to vector<4x128xf32>
      %64 = vector.shape_cast %61 : vector<4x128xf32> to vector<1x4x128xf32>
      tpu.vector_store %arg5[%c0_39, %c0_40, %c0_41], %64 {strides = array<i32>} : memref<1x16x128xf32, #tpu.memory_space<vmem>>, vector<1x4x128xf32>,
      %c0_42 = arith.constant 0 : index
      %c0_43 = arith.constant 0 : index
      %65 = vector.load %arg7[%c0_42, %c0_43] : memref<4x128xf32, #tpu.memory_space<vmem>>, vector<4x128xf32>
      %c0_44 = arith.constant 0 : index
      %c4 = arith.constant 4 : index
      %c0_45 = arith.constant 0 : index
      %66 = vector.load %arg5[%c0_44, %c4, %c0_45] : memref<1x16x128xf32, #tpu.memory_space<vmem>>, vector<1x4x128xf32>
      %67 = vector.shape_cast %66 : vector<1x4x128xf32> to vector<4x128xf32>
      %68 = vector.shape_cast %65 : vector<4x128xf32> to vector<1x4x128xf32>
      tpu.vector_store %arg5[%c0_44, %c4, %c0_45], %68 {strides = array<i32>} : memref<1x16x128xf32, #tpu.memory_space<vmem>>, vector<1x4x128xf32>,
      %c0_46 = arith.constant 0 : index
      %c0_47 = arith.constant 0 : index
      %69 = vector.load %arg8[%c0_46, %c0_47] : memref<4x128xf32, #tpu.memory_space<vmem>>, vector<4x128xf32>
      %c0_48 = arith.constant 0 : index
      %c8 = arith.constant 8 : index
      %c0_49 = arith.constant 0 : index
      %70 = vector.load %arg5[%c0_48, %c8, %c0_49] : memref<1x16x128xf32, #tpu.memory_space<vmem>>, vector<1x4x128xf32>
      %71 = vector.shape_cast %70 : vector<1x4x128xf32> to vector<4x128xf32>
      %72 = vector.shape_cast %69 : vector<4x128xf32> to vector<1x4x128xf32>
      tpu.vector_store %arg5[%c0_48, %c8, %c0_49], %72 {strides = array<i32>} : memref<1x16x128xf32, #tpu.memory_space<vmem>>, vector<1x4x128xf32>,
      %c0_50 = arith.constant 0 : index
      %c0_51 = arith.constant 0 : index
      %73 = vector.load %arg9[%c0_50, %c0_51] : memref<1x128xf32, #tpu.memory_space<vmem>>, vector<1x128xf32>
      %c0_52 = arith.constant 0 : index
      %c12 = arith.constant 12 : index
      %c0_53 = arith.constant 0 : index
      %74 = vector.load %arg5[%c0_52, %c12, %c0_53] : memref<1x16x128xf32, #tpu.memory_space<vmem>>, vector<1x1x128xf32>
      %75 = vector.shape_cast %74 : vector<1x1x128xf32> to vector<1x128xf32>
      %76 = vector.shape_cast %73 : vector<1x128xf32> to vector<1x1x128xf32>
      tpu.vector_store %arg5[%c0_52, %c12, %c0_53], %76 {strides = array<i32>} : memref<1x16x128xf32, #tpu.memory_space<vmem>>, vector<1x1x128xf32>,
      %cst_54 = arith.constant 0.000000e+00 : f32
      %77 = vector.broadcast %cst_54 : f32 to vector<3x128xf32>
      %c0_55 = arith.constant 0 : index
      %c13 = arith.constant 13 : index
      %c0_56 = arith.constant 0 : index
      %78 = vector.load %arg5[%c0_55, %c13, %c0_56] : memref<1x16x128xf32, #tpu.memory_space<vmem>>, vector<1x3x128xf32>
      %79 = vector.shape_cast %78 : vector<1x3x128xf32> to vector<3x128xf32>
      %80 = vector.shape_cast %77 : vector<3x128xf32> to vector<1x3x128xf32>
      tpu.vector_store %arg5[%c0_55, %c13, %c0_56], %80 {strides = array<i32>} : memref<1x16x128xf32, #tpu.memory_space<vmem>>, vector<1x3x128xf32>,
    } else {
    }
    return
  }
  func.func @transform_0(%arg0: i32, %arg1: i32) -> (i32, i32, i32, i32) {
    %c0_i32 = arith.constant 0 : i32
    %c0_i32_0 = arith.constant 0 : i32
    %c0_i32_1 = arith.constant 0 : i32
    return %arg0, %c0_i32, %arg1, %c0_i32_0 : i32, i32, i32, i32
  }
  func.func @transform_1(%arg0: i32, %arg1: i32) -> (i32, i32, i32, i32) {
    %c0_i32 = arith.constant 0 : i32
    %c0_i32_0 = arith.constant 0 : i32
    %c0_i32_1 = arith.constant 0 : i32
    return %arg0, %c0_i32, %arg1, %c0_i32_0 : i32, i32, i32, i32
  }
  func.func @transform_2(%arg0: i32, %arg1: i32) -> (i32, i32, i32, i32) {
    %c0_i32 = arith.constant 0 : i32
    %c0_i32_0 = arith.constant 0 : i32
    %c0_i32_1 = arith.constant 0 : i32
    return %arg0, %c0_i32, %arg1, %c0_i32_0 : i32, i32, i32, i32
  }
  func.func @transform_3(%arg0: i32, %arg1: i32) -> (i32, i32, i32) {
    %c0_i32 = arith.constant 0 : i32
    %c0_i32_0 = arith.constant 0 : i32
    %c0_i32_1 = arith.constant 0 : i32
    return %arg0, %c0_i32, %c0_i32_0 : i32, i32, i32
  }
}

</mosaic_0001>

<bundles_post_ra>
// kernel: dc_and_ce_loss.1
= control target key start
LH: loop header
LB: loop body
LE: loop exit
PB: predicated region body
PF: predicated region fallthrough
CT: control target
= control target key end

     0   :  { %s677_s12 = smov 0   ;;  %s679_s13 = smov 0   ;;  %s777_s0 = inlined_call_operand.vmem [shape: f32[2,4,8,128], index: 0, kind: input, shape index: {}]   ;;  %s778_s1 = inlined_call_operand.vmem [shape: s32[2,1,8,128], index: 1, kind: input, shape index: {}]   ;;  %s779_s2 = inlined_call_operand.vmem [shape: f32[2,1,8,128], index: 2, kind: input, shape index: {}]   ;;  %s780_s3 = inlined_call_operand.vmem [shape: f32[2,16,128], index: 3, kind: output, shape index: {}]  }
   0x1   :  { %s681_s14 = smov 0  }
   0x2 LB: > { %s25_s15 = sadd.s32 1, %s650_s13  ;;  %p579_p0 = scmp.ge.s32.totalorder %s654_s14, 1  ;;  %s654_s14 = sphi %s681_s14, %s13_s14   ;;  %s650_s13 = sphi %s679_s13, %s782_s13   ;;  %s646_s12 = sphi %s677_s12, %s781_s12  }
   0x3   : > { %p27_p1 = scmp.ge.s32.totalorder %s25_s15, 2  ;;  %p182_p2 = scmp.lt.s32.totalorder %s654_s14, 3 }
   0x5   : > { %s784_s15 = smov (%p27_p1, %s25_s15), 0  ;;  %p183_p3 = pnand %p579_p0, %p182_p2 }
   0x6   : > { %p223_p4 = scmp.lt.s32.totalorder (!%p183_p3), %s646_s12, 1 }
   0x7   : > { %186 = sbr.rel (%p183_p3) target bundleno = 101 (0x65), region = 32 }
   0xc   : > { %v656_v0 = vmov 0.0   ;;  %s786_s12 = smov (!%p223_p4, %s646_s12), 1  ;;  %vm376_vm9 = vcmask 1041409   ;;  %vm378_vm10 = vcmask 1042434   ;;  %vm380_vm11 = vcmask 1043459  }
   0xd   : > { %254 = vst [vmem:[#allocation2] sm:$0xf] %v656_v0  ;;  %s593_s16 = sshll.u32 %s786_s12, 5  ;;  %s594_s20 = sshll.u32 %s786_s12, 4 }
   0xe   : > { %255 = vst [vmem:[#allocation3] sm:$0xf] %v656_v0  ;;  %s230_s19 = scalar_lea.vmem %s777_s0, %s593_s16  ;;  %s709_s23 = scalar_lea.vmem %s780_s3, %s594_s20 }
   0xf   : > { %256 = vst [vmem:[#allocation4] sm:$0xf] %v656_v0  ;;  %v258_v1 = vld [vmem:[%s230_s19] sm:$0xff]  ;;  %v259_v2 = vld [vmem:[%s230_s19 + $0x8] sm:$0xff]  ;;  %v260_v3 = vld [vmem:[%s230_s19 + $0x10] sm:$0xff]  ;;  %s582_s24 = sshll.u32 %s786_s12, 3 }
  0x10   : > { %257 = vst [vmem:[#allocation5] sm:$0x1] %v656_v0  ;;  %v261_v4 = vld [vmem:[%s230_s19 + $0x18] sm:$0xff]  ;;  %v264_v5 = vmax.f32 %v258_v1, %v259_v2  ;;  %s237_s27 = scalar_lea.vmem %s778_s1, %s582_s24  ;;  %s244_s30 = scalar_lea.vmem %s779_s2, %s582_s24 }
  0x11   : > { %v265_v6 = vmax.f32 %v260_v3, %v261_v4  ;;  %475 = vst [vmem:[%s709_s23 + $0xd] sm:$0x7] %v656_v0  ;;  %v262_v16 = vld [vmem:[%s237_s27] sm:$0xff] }
  0x12   : > { %vm303_vm0 = vcmp.eq.s32.totalorder %v262_v16, 0  ;;  %vm304_vm1 = vcmp.eq.s32.totalorder %v262_v16, 1  ;;  %vm305_vm2 = vcmp.eq.s32.totalorder %v262_v16, 2  ;;  %vm306_vm3 = vcmp.eq.s32.totalorder %v262_v16, 3  ;;  %v263_v43 = vld [vmem:[%s244_s30] sm:$0xff] }
  0x13   : > { %v266_v7 = vmax.f32 %v264_v5, %v265_v6  ;;  %v586_v19 = vsel %vm303_vm0, 1.0, %v656_v0  ;;  %v587_v20 = vsel %vm304_vm1, 1.0, %v656_v0  ;;  %v588_v27 = vsel %vm305_vm2, 1.0, %v656_v0 }
  0x14   : > { %v335_v25 = vmul.f32 %v586_v19, %v258_v1  ;;  %v336_v26 = vmul.f32 %v587_v20, %v259_v2  ;;  %v337_v29 = vmul.f32 %v588_v27, %v260_v3  ;;  %v589_v31 = vsel %vm306_vm3, 1.0, %v656_v0 }
  0x15   : > { %v267_v8 = vsub.f32 %v258_v1, %v266_v7  ;;  %v268_v9 = vsub.f32 %v259_v2, %v266_v7  ;;  %v269_v10 = vsub.f32 %v260_v3, %v266_v7  ;;  %v270_v11 = vsub.f32 %v261_v4, %v266_v7 }
  0x16   : > { %v339_v30 = vadd.f32 %v336_v26, %v335_v25  ;;  %v338_v32 = vmul.f32 %v589_v31, %v261_v4  ;;  %vm342_vm4 = vcmp.ge.s32.totalorder %v262_v16, 0  ;;  %v729_v49 = vmul.f32 %v586_v19, %v263_v43 }
  0x17   : > { %v271_v12 = vmul.f32 1.442695, %v267_v8  ;;  %v273_v13 = vmul.f32 1.442695, %v268_v9  ;;  %v275_v14 = vmul.f32 1.442695, %v269_v10  ;;  %v731_v52 = vmul.f32 %v587_v20, %v263_v43 }
  0x18   : > { %v277_v15 = vmul.f32 1.442695, %v270_v11  ;;  %v340_v33 = vadd.f32 %v339_v30, %v337_v29  ;;  %v590_v45 = vsel %vm342_vm4, 1.0, %v656_v0  ;;  %v733_v53 = vmul.f32 %v588_v27, %v263_v43 }
  0x19   : > { %620 = vpow2.f32 %v271_v12  ;;  %v735_v54 = vmul.f32 %v589_v31, %v263_v43 }
  0x1a   : > { %622 = vpow2.f32 %v273_v13  ;;  %v341_v39 = vadd.f32 %v340_v33, %v338_v32 }
  0x1b   : > { %624 = vpow2.f32 %v275_v14 }
  0x1c   : > { %626 = vpow2.f32 %v277_v15 }
  0x1f   : > { %v621_v17 = vpop.eup %620 }
  0x20   : > { %v623_v18 = vpop.eup %622 }
  0x21   : > { %v625_v21 = vpop.eup %624  ;;  %v279_v22 = vadd.f32 %v623_v18, %v621_v17 }
  0x22   : > { %v627_v23 = vpop.eup %626 }
  0x23   : > { %v280_v24 = vadd.f32 %v625_v21, %v279_v22 }
  0x25   : > { %v281_v28 = vadd.f32 %v627_v23, %v280_v24 }
  0x27   : > { %628 = vrcp.f32 %v281_v28  ;;  %v293_v37 = vand.u32 2147483648, %v281_v28  ;;  %vm287_vm5 = vweird.f32 %v281_v28  ;;  %v291_v41 = vand.u32 2147483647, %v281_v28 }
  0x28   : > { %630 = vlog2.f32 %v281_v28 }
  0x29   : > { %v294_v46 = vor.u32 1.1754944e-38, %v293_v37  ;;  %vm292_vm8 = vcmp.eq.f32.partialorder %v291_v41, 8.507059e+37 }
  0x2d   : > { %v629_v34 = vpop.eup %628 }
  0x2e   : > { %v631_v35 = vpop.eup %630  ;;  %v283_v36 = vmul.f32 %v629_v34, %v281_v28  ;;  %vm288_vm6 = vweird.f32 %v629_v34 }
  0x2f   : > { %v301_v38 = vmul.f32 0.6931472, %v631_v35  ;;  %vm289_vm7 = vmor %vm287_vm5, %vm288_vm6 }
  0x30   : > { %v284_v40 = vsub.f32 1.0, %v283_v36 }
  0x31   : > { %v302_v42 = vadd.f32 %v301_v38, %v266_v7 }
  0x32   : > { %v285_v44 = vmul.f32 %v629_v34, %v284_v40 }
  0x33   : > { %v345_v47 = vsub.f32 %v302_v42, %v341_v39 }
  0x34   : > { %v286_v48 = vadd.f32 %v629_v34, %v285_v44 }
  0x35   : > { %v346_v50 = vmul.f32 %v590_v45, %v345_v47 }
  0x36   : > { %v290_v51 = vsel %vm289_vm7, %v629_v34, %v286_v48 }
  0x37   : > { %v295_v55 = vsel %vm292_vm8, %v294_v46, %v290_v51  ;;  %v456_v56 = vrot.slane %v346_v50, 4 }
  0x38   : > { %v296_v57 = vmul.f32 %v621_v17, %v295_v55  ;;  %v297_v58 = vmul.f32 %v623_v18, %v295_v55  ;;  %v298_v59 = vmul.f32 %v625_v21, %v295_v55  ;;  %v299_v60 = vmul.f32 %v627_v23, %v295_v55 }
  0x39   : > { %v737_v61 = vadd.f32 %v456_v56, %v346_v50 }
  0x3a   : > { %v323_v62 = vmul.f32 %v729_v49, %v296_v57  ;;  %v324_v63 = vmul.f32 %v731_v52, %v297_v58  ;;  %v325_v0 = vmul.f32 %v733_v53, %v298_v59  ;;  %v743_v1 = vmul.f32 %v735_v54, %v299_v60 }
  0x3b   : > { %v315_v2 = vmul.f32 %v296_v57, %v263_v43  ;;  %v316_v3 = vmul.f32 %v297_v58, %v263_v43  ;;  %v317_v4 = vmul.f32 %v298_v59, %v263_v43  ;;  %v318_v5 = vmul.f32 %v299_v60, %v263_v43  ;;  %v347_v58 = vld [vmem:[#allocation2] sm:$0xf] }
  0x3c   : > { %v348_v6 = vrot.slane %v323_v62, 4  ;;  %v354_v7 = vrot.slane %v324_v63, 4  ;;  %v360_v8 = vrot.slane %v325_v0, 4  ;;  %v366_v9 = vrot.slane %v743_v1, 4 }
  0x3d   : > { %v327_v10 = vsub.f32 %v315_v2, %v323_v62  ;;  %v328_v11 = vsub.f32 %v316_v3, %v324_v63  ;;  %v329_v12 = vsub.f32 %v317_v4, %v325_v0  ;;  %v330_v13 = vsub.f32 %v318_v5, %v743_v1 }
  0x3e   : > { %v349_v14 = vadd.f32 %v348_v6, %v323_v62  ;;  %v355_v15 = vadd.f32 %v354_v7, %v324_v63  ;;  %v361_v16 = vadd.f32 %v360_v8, %v325_v0  ;;  %v367_v17 = vadd.f32 %v366_v9, %v743_v1 }
  0x3f   : > { %v386_v18 = vrot.slane %v327_v10, 4  ;;  %v392_v19 = vrot.slane %v328_v11, 4  ;;  %v398_v20 = vrot.slane %v329_v12, 4  ;;  %v404_v21 = vrot.slane %v330_v13, 4 }
  0x40   : > { %v350_v22 = vrot.slane %v349_v14, 2  ;;  %v356_v23 = vrot.slane %v355_v15, 2  ;;  %v362_v24 = vrot.slane %v361_v16, 2  ;;  %v368_v25 = vrot.slane %v367_v17, 2 }
  0x41   : > { %v387_v26 = vadd.f32 %v386_v18, %v327_v10  ;;  %v393_v27 = vadd.f32 %v392_v19, %v328_v11  ;;  %v399_v28 = vadd.f32 %v398_v20, %v329_v12  ;;  %v405_v29 = vadd.f32 %v404_v21, %v330_v13  ;;  %v385_v13 = vld [vmem:[#allocation3] sm:$0xf] }
  0x42   : > { %v351_v30 = vadd.f32 %v350_v22, %v349_v14  ;;  %v357_v31 = vadd.f32 %v356_v23, %v355_v15  ;;  %v363_v32 = vadd.f32 %v362_v24, %v361_v16  ;;  %v369_v33 = vadd.f32 %v368_v25, %v367_v17 }
  0x43   : > { %v388_v34 = vrot.slane %v387_v26, 2  ;;  %v394_v35 = vrot.slane %v393_v27, 2  ;;  %v400_v36 = vrot.slane %v399_v28, 2  ;;  %v406_v37 = vrot.slane %v405_v29, 2 }
  0x44   : > { %v352_v38 = vrot.slane %v351_v30, 1  ;;  %v358_v39 = vrot.slane %v357_v31, 1  ;;  %v364_v40 = vrot.slane %v363_v32, 1  ;;  %v370_v41 = vrot.slane %v369_v33, 1 }
  0x45   : > { %v389_v42 = vadd.f32 %v388_v34, %v387_v26  ;;  %v395_v43 = vadd.f32 %v394_v35, %v393_v27  ;;  %v401_v44 = vadd.f32 %v400_v36, %v399_v28  ;;  %v407_v45 = vadd.f32 %v406_v37, %v405_v29  ;;  %v455_v27 = vld [vmem:[#allocation5] sm:$0x1] }
  0x46   : > { %v353_v46 = vadd.f32 %v352_v38, %v351_v30  ;;  %v359_v47 = vadd.f32 %v358_v39, %v357_v31  ;;  %v365_v48 = vadd.f32 %v364_v40, %v363_v32  ;;  %v371_v50 = vadd.f32 %v370_v41, %v369_v33  ;;  %v420_v39 = vld [vmem:[#allocation4] sm:$0xf] }
  0x47   : > { %v390_v51 = vrot.slane %v389_v42, 1  ;;  %v396_v55 = vrot.slane %v395_v43, 1  ;;  %v402_v56 = vrot.slane %v401_v44, 1  ;;  %v408_v57 = vrot.slane %v407_v45, 1 }
  0x48   : > { %v377_v59 = vsel %vm376_vm9, %v359_v47, %v353_v46  ;;  %v331_v60 = vsub.f32 %v729_v49, %v323_v62  ;;  %v332_v2 = vsub.f32 %v731_v52, %v324_v63  ;;  %v333_v3 = vsub.f32 %v733_v53, %v325_v0 }
  0x49   : > { %v379_v4 = vsel %vm378_vm10, %v365_v48, %v377_v59  ;;  %v391_v5 = vadd.f32 %v390_v51, %v389_v42  ;;  %v397_v6 = vadd.f32 %v396_v55, %v395_v43  ;;  %v403_v7 = vadd.f32 %v402_v56, %v401_v44 }
  0x4a   : > { %v381_v8 = vsel %vm380_vm11, %v371_v50, %v379_v4  ;;  %v409_v9 = vadd.f32 %v408_v57, %v407_v45  ;;  %v334_v10 = vsub.f32 %v735_v54, %v743_v1  ;;  %v421_v11 = vrot.slane %v331_v60, 4 }
  0x4b   : > { %v383_v12 = vadd.f32 %v381_v8, %v347_v58  ;;  %v414_v49 = vsel %vm376_vm9, %v397_v6, %v391_v5  ;;  %v427_v62 = vrot.slane %v332_v2, 4  ;;  %v433_v52 = vrot.slane %v333_v3, 4 }
  0x4c   : > { %v415_v53 = vsel %vm378_vm10, %v403_v7, %v414_v49  ;;  %v422_v63 = vadd.f32 %v421_v11, %v331_v60  ;;  %v439_v0 = vrot.slane %v334_v10, 4  ;;  %v458_v14 = vrot.slane %v737_v61, 2 }
  0x4d   : > { %384 = vst [vmem:[#allocation2] sm:$0xf] %v383_v12  ;;  %v416_v15 = vsel %vm380_vm11, %v409_v9, %v415_v53  ;;  %v428_v16 = vadd.f32 %v427_v62, %v332_v2  ;;  %v434_v17 = vadd.f32 %v433_v52, %v333_v3 }
  0x4e   : > { %v418_v18 = vadd.f32 %v416_v15, %v385_v13  ;;  %v423_v54 = vrot.slane %v422_v63, 2  ;;  %v440_v1 = vadd.f32 %v439_v0, %v334_v10  ;;  %v459_v19 = vadd.f32 %v458_v14, %v737_v61 }
  0x4f   : > { %v429_v20 = vrot.slane %v428_v16, 2  ;;  %v435_v21 = vrot.slane %v434_v17, 2 }
  0x50   : > { %419 = vst [vmem:[#allocation3] sm:$0xf] %v418_v18  ;;  %v424_v22 = vadd.f32 %v423_v54, %v422_v63  ;;  %v441_v23 = vrot.slane %v440_v1, 2  ;;  %v460_v24 = vrot.slane %v459_v19, 1 }
  0x51   : > { %v430_v25 = vadd.f32 %v429_v20, %v428_v16  ;;  %v436_v26 = vadd.f32 %v435_v21, %v434_v17 }
  0x52   : > { %v425_v28 = vrot.slane %v424_v22, 1  ;;  %v442_v29 = vadd.f32 %v441_v23, %v440_v1  ;;  %v461_v30 = vadd.f32 %v460_v24, %v459_v19 }
  0x53   : > { %v431_v31 = vrot.slane %v430_v25, 1  ;;  %v437_v32 = vrot.slane %v436_v26, 1 }
  0x54   : > { %v426_v33 = vadd.f32 %v425_v28, %v424_v22  ;;  %v443_v34 = vrot.slane %v442_v29, 1  ;;  %v462_v35 = vadd.f32 %v461_v30, %v455_v27  ;;  %v467_v61 = vld [vmem:[#allocation2] sm:$0xf] }
  0x55   : > { %v432_v36 = vadd.f32 %v431_v31, %v430_v25  ;;  %v438_v37 = vadd.f32 %v437_v32, %v436_v26  ;;  %468 = vst [vmem:[%s709_s23] sm:$0xf] %v467_v61 }
  0x56   : > { %v444_v38 = vadd.f32 %v443_v34, %v442_v29  ;;  %463 = vst [vmem:[#allocation5] sm:$0x1] %v462_v35 }
  0x57   : > { %v449_v40 = vsel %vm376_vm9, %v432_v36, %v426_v33  ;;  %v469_v41 = vld [vmem:[#allocation3] sm:$0xf] }
  0x58   : > { %v450_v42 = vsel %vm378_vm10, %v438_v37, %v449_v40  ;;  %470 = vst [vmem:[%s709_s23 + $0x4] sm:$0xf] %v469_v41 }
  0x59   : > { %v451_v43 = vsel %vm380_vm11, %v444_v38, %v450_v42 }
  0x5a   : > { %v453_v44 = vadd.f32 %v451_v43, %v420_v39 }
  0x5c   : > { %454 = vst [vmem:[#allocation4] sm:$0xf] %v453_v44 }
  0x5d   : > { %v473_v45 = vld [vmem:[#allocation5] sm:$0x1] }
  0x5e   : > { %474 = vst [vmem:[%s709_s23 + $0xc] sm:$0x1] %v473_v45 }
  0x63   : > { %v471_v46 = vld [vmem:[#allocation4] sm:$0xf] }
  0x64   : > { %472 = vst [vmem:[%s709_s23 + $0x8] sm:$0xf] %v471_v46 }
  0x65 PF: > { %s13_s14 = sadd.s32 1, %s654_s14   ;;  %s781_s12 = smov %s650_s13 }
  0x66   : > { %p10_p5 = scmp.ge.s32.totalorder %s13_s14, 4   ;;  %s782_s13 = smov %s784_s15 }
  0x68   :  { %12 = sbr.rel (!%p10_p5) target bundleno = 2 (0x2), region = 76 }

</bundles_post_ra>
